<compile_context>
chip_gen: v5e
topology: v5e:2x2
jax: 0.10.0
libtpu: 0.0.40
codegen_flags: <defaults>
</compile_context>

<pallas_src>
import functools

import jax
import jax.numpy as jnp
from jax.experimental import pallas as pl
from jax.experimental.pallas import tpu as pltpu


def _focal_loss_kernel(logits_ref, target_ref, wt_ref, out_ref, acc_ref, *,
                       gamma, n_total, block_rows):
    i = pl.program_id(0)

    @pl.when(i == 0)
    def _init():
        acc_ref[...] = jnp.zeros_like(acc_ref)

    x = logits_ref[...].astype(jnp.float32)      # (TN, C) logits (cast in-tile)
    tgt = target_ref[...]                        # (TN, 1) int32 class indices
    w_t = wt_ref[...]                            # (TN, 1) f32 weight[target] (pre-gathered)
    tn, c = x.shape

    # --- cross entropy (reduction='none') ------------------------------------
    m = jnp.max(x, axis=-1, keepdims=True)                                   # (TN, 1)
    lse = jnp.log(jnp.sum(jnp.exp(x - m), axis=-1, keepdims=True)) + m       # (TN, 1)

    cls = jax.lax.broadcasted_iota(jnp.int32, (tn, c), 1)                    # (TN, C)
    x_t = jnp.sum(jnp.where(cls == tgt, x, 0.0), axis=-1, keepdims=True)     # logits@target

    ce = (lse - x_t) * w_t                                                   # (TN, 1)

    # --- focal factor (gamma is a Python-level constant) ----------------------
    if gamma == 0.0:
        loss = ce
    else:
        p = jnp.exp(-ce)
        d = 1.0 - p
        if float(gamma).is_integer() and 1.0 <= gamma <= 4.0:
            factor = d
            for _ in range(int(gamma) - 1):
                factor = factor * d
        else:
            factor = jnp.power(d, jnp.float32(gamma))
        loss = factor * ce

    # --- mask padded tail rows, accumulate partial sum ------------------------
    row = jax.lax.broadcasted_iota(jnp.int32, (tn, 1), 0) + i * block_rows
    loss = jnp.where(row < n_total, loss, 0.0)

    acc_ref[...] += jnp.sum(loss, keepdims=True)                             # (1, 1)

    @pl.when(i == pl.num_programs(0) - 1)
    def _finalize():
        out_ref[...] = acc_ref[...] / jnp.float32(n_total)


def focal_loss_pallas(logits, targets, gamma=0.0, weight=None, block_rows=None):
    """logits: (N, C) float (f32 or bf16); targets: (N,) int; weight: optional (C,) float."""
    assert gamma >= 0
    n, c = logits.shape
    itemsize = jnp.dtype(logits.dtype).itemsize
    sublane = 8 * max(1, 4 // itemsize)          # 8 for f32, 16 for bf16

    # Hoist the weight[target] gather out of the hot (N, C) path.
    if weight is None:
        w_t = jnp.ones((n,), dtype=jnp.float32)
    else:
        w_t = weight.astype(jnp.float32)[targets]

    if block_rows is None:
        # Double-buffered logits stream must fit a conservative VMEM budget on
        # every generation (v5e scoped default 16 MiB, v7x 64 MiB physical).
        budget = 16 * 1024 * 1024
        tn = (budget // (2 * c * itemsize)) // sublane * sublane
        tn = max(sublane, min(1024, tn))
    else:
        tn = max(sublane, -(-int(block_rows) // sublane) * sublane)
    tn = min(tn, -(-n // sublane) * sublane)     # don't exceed (rounded-up) N

    n_pad = -(-n // tn) * tn
    num_tiles = n_pad // tn

    tgt2d = targets.astype(jnp.int32).reshape(n, 1)
    wt2d = w_t.reshape(n, 1)
    logits_p = logits
    if n_pad != n:
        pad = n_pad - n
        logits_p = jnp.pad(logits_p, ((0, pad), (0, 0)))
        tgt2d = jnp.pad(tgt2d, ((0, pad), (0, 0)))
        wt2d = jnp.pad(wt2d, ((0, pad), (0, 0)))     # weight 0 -> padded ce = 0 (also masked)

    kernel = functools.partial(
        _focal_loss_kernel, gamma=float(gamma), n_total=n, block_rows=tn)

    cost = pl.CostEstimate(
        flops=int(5 * n * c),
        transcendentals=int(n * c + 2 * n),
        bytes_accessed=int(n * c * itemsize + 2 * n * 4 + 4),
    )

    out = pl.pallas_call(
        kernel,
        out_shape=jax.ShapeDtypeStruct((1, 1), jnp.float32),
        grid_spec=pltpu.PrefetchScalarGridSpec(
            num_scalar_prefetch=0,
            grid=(num_tiles,),
            in_specs=[
                pl.BlockSpec((tn, c), lambda i: (i, 0)),   # logits tile
                pl.BlockSpec((tn, 1), lambda i: (i, 0)),   # targets tile
                pl.BlockSpec((tn, 1), lambda i: (i, 0)),   # weight[target] tile
            ],
            out_specs=pl.BlockSpec((1, 1), lambda i: (0, 0)),
            scratch_shapes=[pltpu.VMEM((1, 1), jnp.float32)],
        ),
        compiler_params=pltpu.CompilerParams(
            dimension_semantics=("arbitrary",),            # resident accumulator
            vmem_limit_bytes=32 * 1024 * 1024,
        ),
        cost_estimate=cost,
    )(logits_p, tgt2d, wt2d)
    return out[0, 0]


def focal_loss_ref(logits, targets, gamma=0.0, weight=None):
    """Pure-JAX reference mirroring torch.nn.functional.cross_entropy + focal loss."""
    x = logits.astype(jnp.float32)
    lse = jax.scipy.special.logsumexp(x, axis=-1)
    x_t = jnp.take_along_axis(x, targets[:, None].astype(jnp.int32), axis=-1)[:, 0]
    ce = lse - x_t
    if weight is not None:
        ce = ce * weight[targets]
    p = jnp.exp(-ce)
    return jnp.mean((1.0 - p) ** gamma * ce)


if __name__ == "__main__":
    # Small synthetic problem: batch=8, classes=32, gamma=2.0, non-uniform class weights.
    N, C = 8, 32
    GAMMA = 2.0

    key = jax.random.PRNGKey(0)
    k1, k2, k3 = jax.random.split(key, 3)
    logits = jax.random.normal(k1, (N, C), dtype=jnp.float32)
    targets = jax.random.randint(k2, (N,), 0, C, dtype=jnp.int32)
    weight = jnp.linspace(0.5, 1.5, C, dtype=jnp.float32)

    out = focal_loss_pallas(logits, targets, gamma=GAMMA, weight=weight)
    jax.block_until_ready(out)
    ref = focal_loss_ref(logits, targets, gamma=GAMMA, weight=weight)
    assert jnp.allclose(out, ref, rtol=1e-5, atol=1e-6), (out, ref)

    # Exercise the multi-tile + ragged-tail path: N=20 with forced 8-row tiles
    # (3 grid steps, last tile masked), default gamma=0 / weight=None.
    N2 = 20
    logits2 = jax.random.normal(k3, (N2, C), dtype=jnp.float32)
    targets2 = jax.random.randint(k2, (N2,), 0, C, dtype=jnp.int32)
    out2 = focal_loss_pallas(logits2, targets2, gamma=0.0, weight=None, block_rows=8)
    jax.block_until_ready(out2)
    ref2 = focal_loss_ref(logits2, targets2, gamma=0.0, weight=None)
    assert jnp.allclose(out2, ref2, rtol=1e-5, atol=1e-6), (out2, ref2)

    print("KERNEL_OK")
</pallas_src>

<mosaic_0001>
module attributes {stable_mosaic.version = 11 : i64} {
  func.func @_focal_loss_kernel(%arg0: i32, %arg1: memref<8x32xf32, #tpu.memory_space<vmem>>, %arg2: memref<8x1xi32, #tpu.memory_space<vmem>>, %arg3: memref<8x1xf32, #tpu.memory_space<vmem>>, %arg4: memref<1x1xf32, #tpu.memory_space<vmem>>, %arg5: memref<1x1xf32, #tpu.memory_space<vmem>>) attributes {dimension_semantics = [#tpu.dimension_semantics<arbitrary>], iteration_bounds = array<i64: 1>, scalar_prefetch = 0 : i64, scratch_operands = 1 : i64, tpu.core_type = #tpu.core_type<tc>, window_params = [{transform_indices = @transform_0, window_bounds = array<i64: 8, 32>}, {transform_indices = @transform_1, window_bounds = array<i64: 8, 1>}, {transform_indices = @transform_2, window_bounds = array<i64: 8, 1>}, {pipeline_mode = #tpu.pipeline_mode<synchronous>, transform_indices = @transform_3, window_bounds = array<i64: 1, 1>}]} {
    %c0_i32 = arith.constant 0 : i32
    %0 = arith.cmpi eq, %arg0, %c0_i32 : i32
    %1 = arith.extui %0 : i1 to i32
    %c0_i32_0 = arith.constant 0 : i32
    %2 = arith.cmpi ne, %1, %c0_i32_0 : i32
    scf.if %2 {
      %cst_20 = arith.constant 0.000000e+00 : f32
      %50 = vector.broadcast %cst_20 : f32 to vector<1x1xf32>
      %c0_21 = arith.constant 0 : index
      %c0_22 = arith.constant 0 : index
      %51 = vector.load %arg5[%c0_21, %c0_22] : memref<1x1xf32, #tpu.memory_space<vmem>>, vector<1x1xf32>
      tpu.vector_store %arg5[%c0_21, %c0_22], %50 {strides = array<i32>} : memref<1x1xf32, #tpu.memory_space<vmem>>, vector<1x1xf32>,
    } else {
    }
    %c0 = arith.constant 0 : index
    %c0_1 = arith.constant 0 : index
    %3 = vector.load %arg1[%c0, %c0_1] : memref<8x32xf32, #tpu.memory_space<vmem>>, vector<8x32xf32>
    %c0_2 = arith.constant 0 : index
    %c0_3 = arith.constant 0 : index
    %4 = vector.load %arg2[%c0_2, %c0_3] : memref<8x1xi32, #tpu.memory_space<vmem>>, vector<8x1xi32>
    %c0_4 = arith.constant 0 : index
    %c0_5 = arith.constant 0 : index
    %5 = vector.load %arg3[%c0_4, %c0_5] : memref<8x1xf32, #tpu.memory_space<vmem>>, vector<8x1xf32>
    %cst = arith.constant dense<0xFF800000> : vector<8xf32>
    %6 = vector.multi_reduction <maximumf>, %3, %cst [1] : vector<8x32xf32> to vector<8xf32>
    %7 = vector.shape_cast %6 : vector<8xf32> to vector<8x1xf32>
    %8 = vector.broadcast %7 : vector<8x1xf32> to vector<8x32xf32>
    %9 = arith.subf %3, %8 : vector<8x32xf32>
    %10 = math.exp %9 : vector<8x32xf32>
    %cst_6 = arith.constant dense<0.000000e+00> : vector<8xf32>
    %11 = vector.multi_reduction <add>, %10, %cst_6 [1] : vector<8x32xf32> to vector<8xf32>
    %12 = vector.shape_cast %11 : vector<8xf32> to vector<8x1xf32>
    %13 = math.log %12 : vector<8x1xf32>
    %14 = arith.addf %13, %7 : vector<8x1xf32>
    %15 = tpu.iota {dimensions = array<i32: 1>} : vector<8x32xi32>
    %16 = vector.broadcast %4 : vector<8x1xi32> to vector<8x32xi32>
    %17 = arith.cmpi eq, %15, %16 : vector<8x32xi32>
    %cst_7 = arith.constant 0.000000e+00 : f32
    %18 = vector.broadcast %cst_7 : f32 to vector<8x32xf32>
    %19 = arith.select %17, %3, %18 : vector<8x32xi1>, vector<8x32xf32>
    %cst_8 = arith.constant dense<0.000000e+00> : vector<8xf32>
    %20 = vector.multi_reduction <add>, %19, %cst_8 [1] : vector<8x32xf32> to vector<8xf32>
    %21 = vector.shape_cast %20 : vector<8xf32> to vector<8x1xf32>
    %22 = arith.subf %14, %21 : vector<8x1xf32>
    %23 = arith.mulf %22, %5 : vector<8x1xf32>
    %cst_9 = arith.constant 0.000000e+00 : f32
    %24 = vector.broadcast %cst_9 : f32 to vector<8x1xf32>
    %25 = arith.subf %24, %23 : vector<8x1xf32>
    %26 = math.exp %25 : vector<8x1xf32>
    %cst_10 = arith.constant 1.000000e+00 : f32
    %27 = vector.broadcast %cst_10 : f32 to vector<8x1xf32>
    %28 = arith.subf %27, %26 : vector<8x1xf32>
    %29 = arith.mulf %28, %28 : vector<8x1xf32>
    %30 = arith.mulf %29, %23 : vector<8x1xf32>
    %31 = tpu.iota {dimensions = array<i32: 0>} : vector<8x1xi32>
    %c8_i32 = arith.constant 8 : i32
    %32 = arith.muli %arg0, %c8_i32 : i32
    %33 = vector.broadcast %32 : i32 to vector<8x1xi32>
    %34 = arith.addi %31, %33 : vector<8x1xi32>
    %c8_i32_11 = arith.constant 8 : i32
    %35 = vector.broadcast %c8_i32_11 : i32 to vector<8x1xi32>
    %36 = arith.cmpi slt, %34, %35 : vector<8x1xi32>
    %cst_12 = arith.constant 0.000000e+00 : f32
    %37 = vector.broadcast %cst_12 : f32 to vector<8x1xf32>
    %38 = arith.select %36, %30, %37 : vector<8x1xi1>, vector<8x1xf32>
    %c0_13 = arith.constant 0 : index
    %c0_14 = arith.constant 0 : index
    %39 = vector.load %arg5[%c0_13, %c0_14] : memref<1x1xf32, #tpu.memory_space<vmem>>, vector<1x1xf32>
    %40 = vector.shape_cast %38 : vector<8x1xf32> to vector<1x8x1xf32>
    %cst_15 = arith.constant dense<0.000000e+00> : vector<1xf32>
    %41 = vector.multi_reduction <add>, %40, %cst_15 [1, 2] : vector<1x8x1xf32> to vector<1xf32>
    %42 = vector.shape_cast %41 : vector<1xf32> to vector<1x1x1xf32>
    %43 = vector.extract %42[0, 0, 0] : f32 from vector<1x1x1xf32>
    %44 = vector.broadcast %43 : f32 to vector<1x1xf32>
    %45 = arith.addf %39, %44 : vector<1x1xf32>
    %c0_16 = arith.constant 0 : index
    %c0_17 = arith.constant 0 : index
    %46 = vector.load %arg5[%c0_16, %c0_17] : memref<1x1xf32, #tpu.memory_space<vmem>>, vector<1x1xf32>
    tpu.vector_store %arg5[%c0_16, %c0_17], %45 {strides = array<i32>} : memref<1x1xf32, #tpu.memory_space<vmem>>, vector<1x1xf32>,
    %c0_i32_18 = arith.constant 0 : i32
    %47 = arith.cmpi eq, %arg0, %c0_i32_18 : i32
    %48 = arith.extui %47 : i1 to i32
    %c0_i32_19 = arith.constant 0 : i32
    %49 = arith.cmpi ne, %48, %c0_i32_19 : i32
    scf.if %49 {
      %c0_20 = arith.constant 0 : index
      %c0_21 = arith.constant 0 : index
      %50 = vector.load %arg5[%c0_20, %c0_21] : memref<1x1xf32, #tpu.memory_space<vmem>>, vector<1x1xf32>
      %cst_22 = arith.constant 8.000000e+00 : f32
      %51 = vector.broadcast %cst_22 : f32 to vector<1x1xf32>
      %52 = arith.divf %50, %51 : vector<1x1xf32>
      %c0_23 = arith.constant 0 : index
      %c0_24 = arith.constant 0 : index
      %53 = vector.load %arg4[%c0_23, %c0_24] : memref<1x1xf32, #tpu.memory_space<vmem>>, vector<1x1xf32>
      tpu.vector_store %arg4[%c0_23, %c0_24], %52 {strides = array<i32>} : memref<1x1xf32, #tpu.memory_space<vmem>>, vector<1x1xf32>,
    } else {
    }
    return
  }
  func.func @transform_0(%arg0: i32) -> (i32, i32) {
    %c0_i32 = arith.constant 0 : i32
    %c0_i32_0 = arith.constant 0 : i32
    return %arg0, %c0_i32 : i32, i32
  }
  func.func @transform_1(%arg0: i32) -> (i32, i32) {
    %c0_i32 = arith.constant 0 : i32
    %c0_i32_0 = arith.constant 0 : i32
    return %arg0, %c0_i32 : i32, i32
  }
  func.func @transform_2(%arg0: i32) -> (i32, i32) {
    %c0_i32 = arith.constant 0 : i32
    %c0_i32_0 = arith.constant 0 : i32
    return %arg0, %c0_i32 : i32, i32
  }
  func.func @transform_3(%arg0: i32) -> (i32, i32) {
    %c0_i32 = arith.constant 0 : i32
    %c0_i32_0 = arith.constant 0 : i32
    %c0_i32_1 = arith.constant 0 : i32
    return %c0_i32, %c0_i32_0 : i32, i32
  }
}

</mosaic_0001>

<bundles_post_ra>
// kernel: tpu_custom_call.1
= control target key start
LH: loop header
LB: loop body
LE: loop exit
PB: predicated region body
PF: predicated region fallthrough
CT: control target
= control target key end

     0   :  { %vm24_vm0 = vcmask 261120   ;;  %s190_s0 = inlined_call_operand.vmem [shape: f32[8,32], index: 0, kind: input, shape index: {}]   ;;  %s191_s1 = inlined_call_operand.vmem [shape: s32[8,1], index: 1, kind: input, shape index: {}]   ;;  %s192_s2 = inlined_call_operand.vmem [shape: f32[8,1], index: 2, kind: input, shape index: {}]   ;;  %s193_s3 = inlined_call_operand.hbm [shape: f32[1,1], index: 3, kind: output, shape index: {}]  }
   0x1   :  { %v21_v0 = vld [vmem:[%s190_s0] sm:$0xff] }
   0x2   :  { %8 = vsyncpa [#allocation4], 0  ;;  %v25_v1 = vsel %vm24_vm0, %v21_v0, -inf  ;;  %v148_v2 = vmov 0   ;;  %v22_v3 = vld [vmem:[%s191_s1] sm:$0xff]  ;;  %v37_v9 = vlaneseq  ;;  %vm63_vm2 = vcmask 7168  }
   0x3   :  { %113 = vset.pattern.permute.xlu0 %v148_v2  ;;  %v23_v19 = vld [vmem:[%s192_s2] sm:$0xff]  ;;  %vm19_vm3 = vcmask 0   ;;  %v149_v29 = vmov 0.0   ;;  %v150_v37 = vmov 8.0   ;;  %s151_s16 = smov [#allocation3]   ;;  %s98_s20 = sshll.u32 %s193_s3, 4  ;;  %s99_s20 = int_to_ptr.hbm [resolvable:$true] %s98_s20 }
   0x4   :  { %26 = vmax.xlane.f32.xlu0 %v25_v1  ;;  %v38_v10 = vand.u32 127, %v37_v9  ;;  %20 = vst.msk [vmem:[#allocation2] sm:$0x1] %vm19_vm3, %v149_v29  ;;  %s96_s17 = sshll.u32 %s151_s16, 4  ;;  %s97_s17 = int_to_ptr.vmem [resolvable:$true] %s96_s17 }
   0xb   :  { %v62_v41 = vld [vmem:[#allocation2] sm:$0x1] }
  0x18   :  { %40 = vperm.xlu0 %113, %v22_v3  }
  0x77   :  { %v27_v4 = vpop.xlane.xlu0 %26 }
  0x78   :  { %v28_v5 = vsub.f32 %v21_v0, %v27_v4 }
  0x7a   :  { %v29_v6 = vmul.f32 1.442695, %v28_v5 }
  0x7c   :  { %114 = vpow2.f32 %v29_v6 }
  0x82   :  { %v115_v7 = vpop.eup %114 }
  0x83   :  { %v31_v8 = vsel %vm24_vm0, %v115_v7, 0.0 }
  0x84   :  { %32 = vadd.xlane.f32.xlu1 %v31_v8 }
  0x8a   :  { %v41_v11 = vpop.permute.xlu0 %40 }
  0x8b   :  { %vm42_vm1 = vcmp.eq.s32.totalorder %v38_v10, %v41_v11 }
  0x8c   :  { %v43_v12 = vsel %vm42_vm1, %v21_v0, 0.0 }
  0x8d   :  { %v44_v13 = vsel %vm24_vm0, %v43_v12, 0.0 }
  0x8e   :  { %45 = vadd.xlane.f32.xlu1 %v44_v13 }
  0xf7   :  { %v33_v14 = vpop.xlane.xlu1 %32 }
  0xf8   :  { %116 = vlog2.f32 %v33_v14 }
  0xfe   :  { %v117_v15 = vpop.eup %116 }
  0xff   :  { %v35_v16 = vmul.f32 0.6931472, %v117_v15 }
 0x101   :  { %v36_v17 = vadd.f32 %v35_v16, %v27_v4  ;;  %v46_v18 = vpop.xlane.xlu1 %45 }
 0x103   :  { %v47_v20 = vsub.f32 %v36_v17, %v46_v18 }
 0x105   :  { %v48_v21 = vmul.f32 %v47_v20, %v23_v19 }
 0x107   :  { %v49_v22 = vsub.f32 0.0, %v48_v21 }
 0x109   :  { %v50_v23 = vmul.f32 1.442695, %v49_v22 }
 0x10b   :  { %118 = vpow2.f32 %v50_v23 }
 0x10c   :  { %120 = vrcp.f32 %v150_v37 }
 0x111   :  { %v119_v24 = vpop.eup %118 }
 0x112   :  { %v52_v25 = vsub.f32 1.0, %v119_v24  ;;  %v121_v38 = vpop.eup %120 }
 0x113   :  { %v83_v39 = vmul.f32 8.0, %v121_v38  ;;  %vm87_vm4 = vweird.f32 %v121_v38 }
 0x114   :  { %v53_v26 = vmul.f32 %v52_v25, %v52_v25 }
 0x115   :  { %v84_v40 = vsub.f32 1.0, %v83_v39 }
 0x116   :  { %v54_v27 = vmul.f32 %v53_v26, %v48_v21 }
 0x117   :  { %v85_v43 = vmul.f32 %v121_v38, %v84_v40 }
 0x118   :  { %v64_v28 = vsel %vm63_vm2, %v54_v27, 0.0 }
 0x119   :  { %65 = vadd.xlane.f32.xlu2 %v64_v28  ;;  %v86_v45 = vadd.f32 %v121_v38, %v85_v43 }
 0x11b   :  { %v88_v46 = vsel %vm87_vm4, %v121_v38, %v86_v45 }
 0x18c   :  { %v66_v30 = vpop.xlane.xlu2 %65 }
 0x18d   :  { %v67_v31 = vrot.slane %v66_v30, 4 }
 0x18f   :  { %v68_v32 = vadd.f32 %v67_v31, %v66_v30 }
 0x191   :  { %v69_v33 = vrot.slane %v68_v32, 2 }
 0x193   :  { %v70_v34 = vadd.f32 %v69_v33, %v68_v32 }
 0x195   :  { %v71_v35 = vrot.slane %v70_v34, 1 }
 0x197   :  { %v72_v36 = vadd.f32 %v71_v35, %v70_v34 }
 0x199   :  { %107 = vpush %v72_v36 }
 0x1ca   :  { %s108_s2 = spop %107 }
 0x1cb   :  { %v74_v42 = vstv %s108_s2 }
 0x1cc   :  { %v75_v44 = vadd.f32 %v74_v42, %v62_v41 }
 0x1ce   :  { %77 = vst.msk [vmem:[#allocation2] sm:$0x1] %vm19_vm3, %v75_v44 }
 0x1d5   :  { %v81_v47 = vld [vmem:[#allocation2] sm:$0x1] }
 0x1d6   :  { %v89_v48 = vmul.f32 %v88_v46, %v81_v47 }
 0x1d8   :  { %90 = vst.msk [vmem:[#allocation3] sm:$0x1] %vm19_vm3, %v89_v48 }
 0x1d9   :  { %101 = dma.vmem_to_hbm [thread:$0]  %s97_s17, 16, %s99_s20, [#allocation4]  }
 0x1da   :  { %146 = dma.done.wait [#allocation4], 16  }
 0x1db   :  { %147 = vsyncadd [#allocation4], 4294967280 }
 0x1dc   :  { %106 = vsyncpa [#allocation4], 1 }

</bundles_post_ra>
